<compile_context>
chip_gen: v7x
topology: tpu7x:2x2x1
jax: 0.10.0
libtpu: 0.0.40
codegen_flags: <defaults>
</compile_context>

<pallas_src>
import functools

import numpy as np
import jax
import jax.numpy as jnp
from jax import lax
from jax.experimental import pallas as pl
from jax.experimental.pallas import tpu as pltpu

NHIDDEN = 128
EPS = 1e-5  # torch.nn.InstanceNorm2d default


# ---------------------------------------------------------------------------
# Fused kernel (primary path): per (channel-block, batch) grid step the whole
# H*W extent of the tile is VMEM-resident, so moments + normalize + modulate
# happen in a single read of x.
# ---------------------------------------------------------------------------
def _adain_fused_kernel(g1_ref, beta_ref, x_ref, o_ref, *, hw_true, n_pad):
    g1 = g1_ref[0]                                   # (c_blk, 1)  = 1 + gamma
    beta = beta_ref[0]                               # (c_blk, 1)
    xf = x_ref[0].astype(jnp.float32)                # (c_blk, HW_pad)

    inv_hw = 1.0 / hw_true
    mean = jnp.sum(xf, axis=-1, keepdims=True) * inv_hw
    d = xf - mean
    ssq = jnp.sum(d * d, axis=-1, keepdims=True)     # two-pass (numerically safe)
    if n_pad:
        # zero-pad columns contribute exactly mean^2 each to ssq; remove them.
        ssq = ssq - float(n_pad) * (mean * mean)
    var = jnp.maximum(ssq * inv_hw, 0.0)

    scale = g1 * lax.rsqrt(var + EPS)                # (c_blk, 1)
    shift = beta - mean * scale
    o_ref[0] = (xf * scale + shift).astype(o_ref.dtype)


# ---------------------------------------------------------------------------
# Streaming fallback (huge H*W): kernel 1 accumulates per-channel moments over
# an "arbitrary" HW grid axis, kernel 2 applies the precomputed scale/shift.
# ---------------------------------------------------------------------------
def _moments_kernel(x_ref, mean_ref, rstd_ref, *, hw_true):
    k = pl.program_id(2)
    xf = x_ref[0].astype(jnp.float32)                # (c_blk, hw_blk)
    s1 = jnp.sum(xf, axis=-1, keepdims=True)
    s2 = jnp.sum(xf * xf, axis=-1, keepdims=True)

    @pl.when(k == 0)
    def _():
        mean_ref[0] = jnp.zeros_like(s1)
        rstd_ref[0] = jnp.zeros_like(s2)

    mean_ref[0] = mean_ref[0] + s1
    rstd_ref[0] = rstd_ref[0] + s2

    @pl.when(k == pl.num_programs(2) - 1)
    def _():
        inv_hw = 1.0 / hw_true
        m = mean_ref[0] * inv_hw
        # single-pass variance only in the streaming regime (sums kept in f32)
        var = jnp.maximum(rstd_ref[0] * inv_hw - m * m, 0.0)
        mean_ref[0] = m
        rstd_ref[0] = lax.rsqrt(var + EPS)


def _modulate_kernel(scale_ref, shift_ref, x_ref, o_ref):
    o_ref[0] = (x_ref[0].astype(jnp.float32) * scale_ref[0]
                + shift_ref[0]).astype(o_ref.dtype)


# ---------------------------------------------------------------------------
# Tiling / budget helpers
# ---------------------------------------------------------------------------
def _vmem_capacity_bytes():
    try:
        return int(pltpu.get_tpu_info().vmem_capacity_bytes)
    except Exception:
        return 64 << 20  # conservative (v7x-sized) default


def _vmem_budgets():
    cap = _vmem_capacity_bytes()
    if cap >= (100 << 20):                 # v5e / v6e: 128 MiB per TensorCore
        vmem_limit = 100 << 20
        buf_budget = 64 << 20
    else:                                  # v7x: 64 MiB per TensorCore (or unknown)
        vmem_limit = min(48 << 20, int(0.75 * cap))
        buf_budget = min(20 << 20, vmem_limit // 2)
    return buf_budget, vmem_limit


def _pick_c_block(C, HW_pad, itemsize, buf_budget_bytes, n_batch):
    """Largest legal channel tile whose double-buffered in+out tiles (+ f32 working
    set) fit the budget.  Returns None when even the smallest legal tile does not
    fit -> caller switches to the HW-streaming two-kernel path."""
    row_bytes = HW_pad * (4 * itemsize + 8)   # 2x(in+out) buffers + f32 intermediates
    max_rows = buf_budget_bytes // row_bytes
    if C % 8 != 0:
        # only legal channel block for the fused (full-HW) path is the full extent
        return C if max_rows >= C else None
    if max_rows < 8:
        return None
    blk = C if max_rows >= C else (max_rows // 8) * 8
    while C % blk != 0:
        blk -= 8

    def _prev_divisor(b):
        b -= 8
        while b >= 8 and C % b != 0:
            b -= 8
        return b if b >= 8 else None

    # keep the grid >= 4 steps when a smaller legal divisor exists (megacore/pipeline)
    while (C // blk) * n_batch < 4:
        nb = _prev_divisor(blk)
        if nb is None:
            break
        blk = nb
    return blk


# ---------------------------------------------------------------------------
# ADAIN forward
# ---------------------------------------------------------------------------
def _gamma_beta(feature, params):
    """Tiny conditioning MLP, evaluated once per call as plain XLA matmuls."""
    N = feature.shape[0]
    f = feature.reshape(N, -1).astype(jnp.float32)
    actv = jnp.maximum(f @ params["w1"].T + params["b1"].T, 0.0)     # (N, NHIDDEN)
    gamma = actv @ params["wg"].T + params["bg"].T                   # (N, C)
    beta = actv @ params["wb"].T + params["bb"].T                    # (N, C)
    return gamma, beta


def _adain_streaming(x3, g1, beta3, HW, HW_pad, itemsize, buf_budget, vmem_limit):
    N, C, _ = x3.shape
    c_blk = C if C % 8 != 0 else min(C, 8)
    per_elem = (4 * itemsize + 8)
    max_cols = max(128, buf_budget // max(1, c_blk * per_elem))
    hw_blk = 128
    for m in range(HW_pad // 128, 0, -1):
        cand = 128 * m
        if HW_pad % cand == 0 and cand <= max_cols:
            hw_blk = cand
            break

    grid = (C // c_blk, N, HW_pad // hw_blk)
    x_spec = pl.BlockSpec((1, c_blk, hw_blk), lambda j, n, k: (n, j, k))
    col_spec = pl.BlockSpec((1, c_blk, 1), lambda j, n, k: (n, j, 0))

    mean, rstd = pl.pallas_call(
        functools.partial(_moments_kernel, hw_true=HW),
        out_shape=(jax.ShapeDtypeStruct((N, C, 1), jnp.float32),
                   jax.ShapeDtypeStruct((N, C, 1), jnp.float32)),
        grid=grid,
        in_specs=[x_spec],
        out_specs=(col_spec, col_spec),
        compiler_params=pltpu.CompilerParams(
            dimension_semantics=("parallel", "parallel", "arbitrary"),
            vmem_limit_bytes=vmem_limit),
        cost_estimate=pl.CostEstimate(
            flops=3 * N * C * HW_pad, transcendentals=N * C,
            bytes_accessed=N * C * HW_pad * itemsize + 8 * N * C),
    )(x3)

    scale = g1 * rstd
    shift = beta3 - mean * scale

    out3 = pl.pallas_call(
        _modulate_kernel,
        out_shape=jax.ShapeDtypeStruct(x3.shape, x3.dtype),
        grid=grid,
        in_specs=[col_spec, col_spec, x_spec],
        out_specs=x_spec,
        compiler_params=pltpu.CompilerParams(
            dimension_semantics=("parallel", "parallel", "parallel"),
            vmem_limit_bytes=vmem_limit),
        cost_estimate=pl.CostEstimate(
            flops=2 * N * C * HW_pad, transcendentals=0,
            bytes_accessed=2 * N * C * HW_pad * itemsize + 8 * N * C),
    )(scale, shift, x3)
    return out3


def adain_forward(x, feature, params):
    """x: (N, C, H, W); feature: (N, ...). Weights in PyTorch (out, in) layout."""
    N, C, H, W = x.shape
    HW = H * W
    HW_pad = ((HW + 127) // 128) * 128          # lane-dense, unmasked stores
    itemsize = jnp.dtype(x.dtype).itemsize

    gamma, beta = _gamma_beta(feature, params)
    g1 = (1.0 + gamma).reshape(N, C, 1)         # pre-added "1 +"
    beta3 = beta.reshape(N, C, 1)

    x3 = x.reshape(N, C, HW)
    if HW_pad != HW:
        x3 = jnp.pad(x3, ((0, 0), (0, 0), (0, HW_pad - HW)))  # exact zeros

    buf_budget, vmem_limit = _vmem_budgets()
    c_blk = _pick_c_block(C, HW_pad, itemsize, buf_budget, N)

    if c_blk is None:
        # Even the smallest legal channel tile of the fused path does not fit VMEM
        # (tiny C with huge H*W): stream over H*W with a two-kernel reduction path.
        out3 = _adain_streaming(x3, g1, beta3, HW, HW_pad, itemsize,
                                buf_budget, vmem_limit)
    else:
        grid = (C // c_blk, N)
        out3 = pl.pallas_call(
            functools.partial(_adain_fused_kernel, hw_true=HW, n_pad=HW_pad - HW),
            out_shape=jax.ShapeDtypeStruct((N, C, HW_pad), x.dtype),
            grid=grid,
            in_specs=[
                pl.BlockSpec((1, c_blk, 1), lambda j, n: (n, j, 0)),       # 1+gamma
                pl.BlockSpec((1, c_blk, 1), lambda j, n: (n, j, 0)),       # beta
                pl.BlockSpec((1, c_blk, HW_pad), lambda j, n: (n, j, 0)),  # x tile
            ],
            out_specs=pl.BlockSpec((1, c_blk, HW_pad), lambda j, n: (n, j, 0)),
            compiler_params=pltpu.CompilerParams(
                dimension_semantics=("parallel", "parallel"),
                vmem_limit_bytes=vmem_limit),
            cost_estimate=pl.CostEstimate(
                flops=6 * N * C * HW_pad, transcendentals=N * C,
                bytes_accessed=2 * N * C * HW_pad * itemsize + 8 * N * C),
        )(g1, beta3, x3)

    if HW_pad != HW:
        out3 = out3[..., :HW]
    return out3.reshape(N, C, H, W)


def init_params(feature_nc, norm_nc):
    """Deterministic synthetic parameters; weights stored (out_features, in_features)."""
    def mk(shape, scale, seed):
        k = jax.random.PRNGKey(seed)
        return (scale * jax.random.normal(k, shape)).astype(jnp.float32)
    return dict(
        w1=mk((NHIDDEN, feature_nc), 0.05, 1),
        b1=mk((NHIDDEN, 1), 0.05, 2),
        wg=mk((norm_nc, NHIDDEN), 0.05, 3),
        bg=mk((norm_nc, 1), 0.05, 4),
        wb=mk((norm_nc, NHIDDEN), 0.05, 5),
        bb=mk((norm_nc, 1), 0.05, 6),
    )


def _reference(x, feature, p):
    """Pure-JAX reference mirroring the PyTorch module."""
    N = feature.shape[0]
    f = feature.reshape(N, -1)
    actv = jnp.maximum(f @ p["w1"].T + p["b1"].T, 0.0)
    gamma = actv @ p["wg"].T + p["bg"].T
    beta = actv @ p["wb"].T + p["bb"].T
    mean = jnp.mean(x, axis=(2, 3), keepdims=True)
    var = jnp.mean((x - mean) ** 2, axis=(2, 3), keepdims=True)   # biased
    normalized = (x - mean) / jnp.sqrt(var + EPS)
    return normalized * (1.0 + gamma[:, :, None, None]) + beta[:, :, None, None]


if __name__ == "__main__":
    # Small shapes consistent with the module: norm_nc=4, feature_nc=32.
    N, C, H, W = 2, 4, 16, 16
    feature_nc = 32

    key = jax.random.PRNGKey(0)
    kx, kf = jax.random.split(key)
    x = jax.random.normal(kx, (N, C, H, W), dtype=jnp.float32)
    feature = jax.random.normal(kf, (N, feature_nc), dtype=jnp.float32)

    params = init_params(feature_nc, C)

    out = jax.block_until_ready(adain_forward(x, feature, params))

    ref = _reference(x, feature, params)
    assert out.shape == (N, C, H, W)
    np.testing.assert_allclose(np.asarray(out), np.asarray(ref), rtol=1e-4, atol=1e-4)

    print("KERNEL_OK")
</pallas_src>

<mosaic_0001>
module attributes {stable_mosaic.version = 11 : i64} {
  func.func @_adain_fused_kernel(%arg0: i32, %arg1: i32, %arg2: memref<1x4x1xf32, #tpu.memory_space<vmem>>, %arg3: memref<1x4x1xf32, #tpu.memory_space<vmem>>, %arg4: memref<1x4x256xf32, #tpu.memory_space<vmem>>, %arg5: memref<1x4x256xf32, #tpu.memory_space<vmem>>) attributes {dimension_semantics = [#tpu.dimension_semantics<parallel>, #tpu.dimension_semantics<parallel>], iteration_bounds = array<i64: 1, 2>, scalar_prefetch = 0 : i64, scratch_operands = 0 : i64, tpu.core_type = #tpu.core_type<tc>, window_params = [{transform_indices = @transform_0, window_bounds = array<i64: 1, 4, 1>}, {transform_indices = @transform_1, window_bounds = array<i64: 1, 4, 1>}, {transform_indices = @transform_2, window_bounds = array<i64: 1, 4, 256>}, {transform_indices = @transform_3, window_bounds = array<i64: 1, 4, 256>}]} {
    %c0 = arith.constant 0 : index
    %c0_0 = arith.constant 0 : index
    %c0_1 = arith.constant 0 : index
    %0 = vector.load %arg2[%c0, %c0_0, %c0_1] : memref<1x4x1xf32, #tpu.memory_space<vmem>>, vector<1x4x1xf32>
    %1 = vector.shape_cast %0 : vector<1x4x1xf32> to vector<4x1xf32>
    %c0_2 = arith.constant 0 : index
    %c0_3 = arith.constant 0 : index
    %c0_4 = arith.constant 0 : index
    %2 = vector.load %arg3[%c0_2, %c0_3, %c0_4] : memref<1x4x1xf32, #tpu.memory_space<vmem>>, vector<1x4x1xf32>
    %3 = vector.shape_cast %2 : vector<1x4x1xf32> to vector<4x1xf32>
    %c0_5 = arith.constant 0 : index
    %c0_6 = arith.constant 0 : index
    %c0_7 = arith.constant 0 : index
    %4 = vector.load %arg4[%c0_5, %c0_6, %c0_7] : memref<1x4x256xf32, #tpu.memory_space<vmem>>, vector<1x4x256xf32>
    %5 = vector.shape_cast %4 : vector<1x4x256xf32> to vector<4x256xf32>
    %cst = arith.constant dense<0.000000e+00> : vector<4xf32>
    %6 = vector.multi_reduction <add>, %5, %cst [1] : vector<4x256xf32> to vector<4xf32>
    %7 = vector.shape_cast %6 : vector<4xf32> to vector<4x1xf32>
    %cst_8 = arith.constant 3.906250e-03 : f32
    %8 = vector.broadcast %cst_8 : f32 to vector<4x1xf32>
    %9 = arith.mulf %7, %8 : vector<4x1xf32>
    %10 = vector.broadcast %9 : vector<4x1xf32> to vector<4x256xf32>
    %11 = arith.subf %5, %10 : vector<4x256xf32>
    %12 = arith.mulf %11, %11 : vector<4x256xf32>
    %cst_9 = arith.constant dense<0.000000e+00> : vector<4xf32>
    %13 = vector.multi_reduction <add>, %12, %cst_9 [1] : vector<4x256xf32> to vector<4xf32>
    %14 = vector.shape_cast %13 : vector<4xf32> to vector<4x1xf32>
    %cst_10 = arith.constant 3.906250e-03 : f32
    %15 = vector.broadcast %cst_10 : f32 to vector<4x1xf32>
    %16 = arith.mulf %14, %15 : vector<4x1xf32>
    %cst_11 = arith.constant 0.000000e+00 : f32
    %17 = vector.broadcast %cst_11 : f32 to vector<4x1xf32>
    %18 = arith.maximumf %16, %17 : vector<4x1xf32>
    %cst_12 = arith.constant 9.99999974E-6 : f32
    %19 = vector.broadcast %cst_12 : f32 to vector<4x1xf32>
    %20 = arith.addf %18, %19 : vector<4x1xf32>
    %21 = math.rsqrt %20 : vector<4x1xf32>
    %22 = arith.mulf %1, %21 : vector<4x1xf32>
    %23 = arith.mulf %9, %22 : vector<4x1xf32>
    %24 = arith.subf %3, %23 : vector<4x1xf32>
    %25 = vector.broadcast %22 : vector<4x1xf32> to vector<4x256xf32>
    %26 = arith.mulf %5, %25 : vector<4x256xf32>
    %27 = vector.broadcast %24 : vector<4x1xf32> to vector<4x256xf32>
    %28 = arith.addf %26, %27 : vector<4x256xf32>
    %c0_13 = arith.constant 0 : index
    %c0_14 = arith.constant 0 : index
    %c0_15 = arith.constant 0 : index
    %29 = vector.load %arg5[%c0_13, %c0_14, %c0_15] : memref<1x4x256xf32, #tpu.memory_space<vmem>>, vector<1x4x256xf32>
    %30 = vector.shape_cast %29 : vector<1x4x256xf32> to vector<4x256xf32>
    %31 = vector.shape_cast %28 : vector<4x256xf32> to vector<1x4x256xf32>
    tpu.vector_store %arg5[%c0_13, %c0_14, %c0_15], %31 {strides = array<i32>} : memref<1x4x256xf32, #tpu.memory_space<vmem>>, vector<1x4x256xf32>,
    return
  }
  func.func @transform_0(%arg0: i32, %arg1: i32) -> (i32, i32, i32) {
    %c0_i32 = arith.constant 0 : i32
    %c0_i32_0 = arith.constant 0 : i32
    return %arg1, %arg0, %c0_i32 : i32, i32, i32
  }
  func.func @transform_1(%arg0: i32, %arg1: i32) -> (i32, i32, i32) {
    %c0_i32 = arith.constant 0 : i32
    %c0_i32_0 = arith.constant 0 : i32
    return %arg1, %arg0, %c0_i32 : i32, i32, i32
  }
  func.func @transform_2(%arg0: i32, %arg1: i32) -> (i32, i32, i32) {
    %c0_i32 = arith.constant 0 : i32
    %c0_i32_0 = arith.constant 0 : i32
    return %arg1, %arg0, %c0_i32 : i32, i32, i32
  }
  func.func @transform_3(%arg0: i32, %arg1: i32) -> (i32, i32, i32) {
    %c0_i32 = arith.constant 0 : i32
    %c0_i32_0 = arith.constant 0 : i32
    return %arg1, %arg0, %c0_i32 : i32, i32, i32
  }
}

</mosaic_0001>

<bundles_post_ra>
// kernel: tpu_custom_call.1
= control target key start
LH: loop header
LB: loop body
LE: loop exit
PB: predicated region body
PF: predicated region fallthrough
CT: control target
= control target key end

     0   :  { %8 = vsyncpa [#allocation3], 0  ;;  %s753_s0 = inlined_call_operand.vmem [shape: f32[2,4,1], index: 0, kind: input, shape index: {}]   ;;  %s754_s1 = inlined_call_operand.vmem [shape: f32[2,4,1], index: 1, kind: input, shape index: {}]   ;;  %s755_s2 = inlined_call_operand.vmem [shape: f32[2,4,256], index: 2, kind: input, shape index: {}]   ;;  %s756_s3 = inlined_call_operand.hbm [shape: f32[2,4,256], index: 3, kind: output, shape index: {}]  }
   0x1   :  { %10 = vsyncpa [#allocation3 + $0x1], 0  ;;  %s627_s12 = smov 0   ;;  %s629_s13 = smov 0  }
   0x2   :  { %s631_s14 = smov 0   ;;  %s633_s15 = smov 0  }
   0x3   :  { %s635_s16 = smov 0   ;;  %s637_s17 = smov 0  }
   0x4 LB: > { %s445_s18 = sadd.s32 4294967295, %s602_s17   ;;  %s446_s19 = sadd.s32 4294967294, %s602_s17   ;;  %s602_s17 = sphi %s637_s17, %s16_s17   ;;  %s598_s16 = sphi %s635_s16, %s763_s16   ;;  %s594_s15 = sphi %s633_s15, %s762_s15   ;;  %s590_s14 = sphi %s631_s14, %s761_s14   ;;  %s586_s13 = sphi %s629_s13, %s760_s13   ;;  %s582_s12 = sphi %s627_s12, %s759_s12  }
   0x5   : > { %s25_s20 = sadd.s32 1, %s598_s16  ;;  %s121_s21 = sadd.s32 1, %s590_s14 }
   0x6   : > { %p26_p0 = scmp.ge.s32.totalorder %s25_s20, 2  ;;  %p131_p1 = scmp.ne.s32.totalorder %s590_s14, %s586_s13 }
   0x7   : > { %p132_p2 = scmp.eq.s32.totalorder %s445_s18, 1  ;;  %p137_p3 = scmp.ne.s32.totalorder %s586_s13, %s582_s12 }
   0x8   : > { %s765_s20 = smov (%p26_p0, %s25_s20), 0  ;;  %p138_p5 = scmp.eq.s32.totalorder %s446_s19, 1 }
   0x9   : > { %p667_p4 = por %p132_p2, %p131_p1  ;;  %s116_s23 = ssub.s32 %s598_s16, %s765_s20 }
   0xa   : > { %p449_p6 = scmp.ge.s32.totalorder %s602_s17, 1  ;;  %p119_p7 = scmp.eq.s32.totalorder %s116_s23, 0 }
   0xb   : > { %p674_p8 = por %p138_p5, %p137_p3  ;;  %p188_p9 = scmp.lt.s32.totalorder %s602_s17, 3 }
   0xc   : > { %s680_s25 = scalar_select %p119_p7, %s590_s14, %s121_s21  }
   0xd   : > { %p189_p10 = pnand %p449_p6, %p188_p9 }
   0xe   : > { %p230_p11 = scmp.lt.s32.totalorder (!%p189_p10), %s594_s15, 1  ;;  %vm259_vm0 = vcmask (!%p189_p10), 1043456   ;;  %v604_v5 = vmov (!%p189_p10), 839922192   ;;  %v270_v7 = vlaneseq (!%p189_p10)  ;;  %v605_v20 = vmov (!%p189_p10), 0   ;;  %s227_s11 = sand.u32 (!%p189_p10), 1, %s586_s13  }
   0xf   : > { %192 = sbr.rel (%p189_p10) target bundleno = 498 (0x1f2), region = 32  ;;  %v268_v6 = vunpack.c.l.s4 (!%p189_p10), %v604_v5  ;;  %519 = vset.pattern.permute.xlu1 (!%p189_p10), %v605_v20  ;;  %520 = vset.pattern.permute.xlu0 (!%p189_p10), %v605_v20  ;;  %s450_s18 = sshll.u32 (!%p189_p10), %s227_s11, 3 }
  0x10   : > { %v271_v9 = vshrl.u32 (!%p189_p10), %v270_v7, 7  ;;  %s461_s19 = sshll.u32 (!%p189_p10), %s594_s15, 7  ;;  %s229_s21 = scalar_lea.vmem (!%p189_p10), [#allocation2], %s450_s18 }
  0x11   : > { %v269_v8 = vunpack.c.0.s8 (!%p189_p10), %v268_v6  ;;  %s336_s23 = sshll.u32 (!%p189_p10), %s229_s21, 4  ;;  %s706_s28 = scalar_lea.hbm (!%p189_p10), %s756_s3, %s461_s19  ;;  %s708_s23 = int_to_ptr.vmem [resolvable:$true] %s336_s23 }
  0x12   : > { %s320_s29 = scalar_lea.sflag (!%p189_p10), [#allocation3], %s227_s11 }
  0x13   : > { %v272_v10 = vsub.s32 (!%p189_p10), %v269_v8, %v271_v9 }
  0x16   : > { %s684_s26 = scalar_select %p230_p11, %s594_s15, 1 }
  0x17   : > { %s606_s15 = smov [#allocation2]  }
  0x18   : > { %s460_s27 = sshll.u32 %s684_s26, 3  ;;  %s451_s4 = sshll.u32 %s684_s26, 2 }
  0x19   : > { %s252_s30 = scalar_lea.vmem %s755_s2, %s460_s27  ;;  %s236_s7 = scalar_lea.vmem %s753_s0, %s451_s4 }
  0x1a   : > { %v255_v0 = vld [vmem:[%s252_s30] sm:$0xff]  ;;  %s243_s10 = scalar_lea.vmem %s754_s1, %s451_s4  ;;  %s524_s30 = scalar_lea.vmem %s708_s23, 128 }
  0x1b   : > { %v257_v1 = vcombine.high %v255_v0, %v255_v0  ;;  %v260_v2 = vsel %vm259_vm0, %v255_v0, 0.0  ;;  %v253_v25 = vld [vmem:[%s236_s7] sm:$0xf]  ;;  %p525_p12 = scmp.ne.s32.totalorder %s708_s23, %s524_s30  ;;  %s528_s4 = sshll.u32 %s606_s15, 4  ;;  %s529_s4 = int_to_ptr.vmem [resolvable:$false] %s528_s4 }
  0x1c   : > { %v254_v28 = vld [vmem:[%s243_s10] sm:$0xf]  ;;  %s530_s5 = scalar_lea.vmem %s529_s4, 256  ;;  %p531_p1 = scmp.lt.s32.totalorder %s708_s23, %s529_s4 }
  0x1d   : > { %v261_v3 = vsel %vm259_vm0, %v257_v1, 0.0  ;;  %p526_p13 = pnand %p525_p12, %p667_p4  ;;  %p532_p2 = scmp.lt.s32.totalorder %s530_s5, %s524_s30 }
  0x1e   : > { %v262_v4 = vadd.f32 %v261_v3, %v260_v2 }
  0x1f   : > { %p527_p0 = pneg %p526_p13  ;;  %p533_p3 = por %p532_p2, %p531_p1 }
  0x20   : > { %263 = vadd.xlane.f32.xlu0 %v262_v4 }
  0x21   : > { %p534_p5 = pnand %p533_p3, %p527_p0 }
  0xad   : > { %v264_v11 = vpop.xlane.xlu0 %263 }
  0xae   : > { %v265_v12 = vmul.f32 0.00390625, %v264_v11 }
  0xb0   : > { %v273_v13 = vrot.slane %v265_v12, %v272_v10 }
  0xb2   : > { %v275_v14 = vsub.f32 %v255_v0, %v273_v13 }
  0xb4   : > { %v276_v15 = vmul.f32 %v275_v14, %v275_v14 }
  0xb6   : > { %v278_v16 = vcombine.high %v276_v15, %v276_v15  ;;  %v280_v17 = vsel %vm259_vm0, %v276_v15, 0.0 }
  0xb8   : > { %v281_v18 = vsel %vm259_vm0, %v278_v16, 0.0 }
  0xb9   : > { %v282_v19 = vadd.f32 %v281_v18, %v280_v17 }
  0xbb   : > { %283 = vadd.xlane.f32.xlu0 %v282_v19 }
 0x148   : > { %v284_v21 = vpop.xlane.xlu0 %283 }
 0x149   : > { %v285_v22 = vmul.f32 0.00390625, %v284_v21 }
 0x14b   : > { %v286_v23 = vmax.f32 %v285_v22, 0.0 }
 0x14d   : > { %v287_v24 = vadd.f32 1e-05, %v286_v23 }
 0x14f   : > { %522 = vrsqrt.f32 %v287_v24 }
 0x159   : > { %v523_v26 = vpop.eup %522 }
 0x15a   : > { %v289_v27 = vmul.f32 %v523_v26, %v253_v25 }
 0x15c   : > { %294 = vperm.xlu1 %519, %v289_v27   ;;  %v290_v29 = vmul.f32 %v289_v27, %v265_v12 }
 0x15e   : > { %v291_v30 = vsub.f32 %v254_v28, %v290_v29 }
 0x160   : > { %307 = vperm.xlu1 %519, %v291_v30  }
 0x1db   : > { %v295_v31 = vpop.permute.xlu1 %294 }
 0x1dc   : > { %v302_v32 = vrot.slane %v295_v31, %v272_v10 }
 0x1de   : > { %v304_v34 = vmul.f32 %v302_v32, %v255_v0 }
 0x1df   : > { %v308_v33 = vpop.permute.xlu1 %307 }
 0x1e0   : > { %v315_v35 = vrot.slane %v308_v33, %v272_v10 }
 0x1e2   : > { %v317_v36 = vadd.f32 %v315_v35, %v304_v34 }
 0x1e4   : > { %318 = vst [vmem:[%s229_s21] sm:$0xff] %v317_v36 }
 0x1e5   : > { %537 = shalt.err (!%p534_p5)
}
 0x1e6   : > { %s538_s6 = scalar_lea.hbm %s706_s28, 128  ;;  %s542_s9 = scalar_lea.hbm %s756_s3, 256 }
 0x1e7   : > { %p539_p6 = scmp.ne.s32.totalorder %s706_s28, %s538_s6  ;;  %p543_p10 = scmp.lt.u32.totalorder %s706_s28, %s756_s3 }
 0x1e8   : > { %p544_p11 = scmp.lt.u32.totalorder %s542_s9, %s538_s6  ;;  %p546_p13 = scmp.lt.u32.totalorder %s538_s6, %s706_s28 }
 0x1e9   : > { %p540_p7 = pnand %p539_p6, %p667_p4 }
 0x1ea   : > { %p545_p12 = por %p544_p11, %p543_p10 }
 0x1eb   : > { %p541_p9 = pneg %p540_p7 }
 0x1ec   : > { %p547_p0 = por %p546_p13, %p545_p12 }
 0x1ee   : > { %p548_p1 = pnand %p547_p0, %p541_p9 }
 0x1f0   : > { %551 = shalt.err (!%p548_p1)
}
 0x1f1   : > { %462 = dma.vmem_to_hbm [thread:$0]  (%p667_p4), %s708_s23, 128, %s706_s28, %s320_s29  }
 0x1f2 PF: > { %p468_p2 = scmp.ge.s32.totalorder %s602_s17, 2  ;;  %s348_s18 = sand.u32 1, %s582_s12  }
 0x1f3   : > { %s349_s19 = scalar_lea.sflag [#allocation3], %s348_s18 }
 0x1f4   : > { %p465_p3 = pnand %p468_p2, %p674_p8 }
 0x1f6   : > { %577 = dma.done.wait (!%p465_p3), %s349_s19, 128  }
 0x1f7   : > { %579 = vsyncadd (!%p465_p3), %s349_s19, 4294967168  ;;  %s16_s17 = sadd.s32 1, %s602_s17   ;;  %s759_s12 = smov %s586_s13 }
 0x1f8   : > { %p13_p5 = scmp.ge.s32.totalorder %s16_s17, 4   ;;  %s760_s13 = smov %s590_s14 }
 0x1f9   : > { %s761_s14 = smov %s680_s25  ;;  %s762_s15 = smov %s598_s16 }
 0x1fa   : > { %s763_s16 = smov %s765_s20  ;;  %15 = sbr.rel (!%p13_p5) target bundleno = 4 (0x4), region = 73 }
 0x201   :  { %354 = vsyncpa [#allocation3], 1 }
 0x202   :  { %356 = vsyncpa [#allocation3 + $0x1], 1 }

</bundles_post_ra>
